<compile_context>
chip_gen: v5e
topology: v5e:2x2
jax: 0.10.0
libtpu: 0.0.40
codegen_flags: <defaults>
</compile_context>

<pallas_src>
import functools

import jax
import jax.numpy as jnp
from jax.experimental import pallas as pl
from jax.experimental.pallas import tpu as pltpu


def _attention_kernel(x_ref, w_ref, vec_ref, o_ref, *, num_heads, batch, seq_len, eps):
    # x_ref: (M, E) with M = N*L (batch folded into the matmul M dimension).
    x = x_ref[...]
    M, E = x.shape
    dh = E // num_heads
    scale = 1.0 / float(dh) ** 0.5

    w = w_ref[...]        # (E, 4E) = [Wq_fused | Wk_fused | Wv_fused | Wo], pre-transposed
    vecs = vec_ref[...]   # (6, E)  = [bq_fused, bk_fused, bv_fused, bo, gamma, beta]

    # Single fused projection matmul (lane-dense: 4E == 128 at E=32).
    proj = jnp.dot(x, w, preferred_element_type=jnp.float32)   # (M, 4E)

    Q = proj[:, 0 * E:1 * E] + vecs[0:1]
    K = proj[:, 1 * E:2 * E] + vecs[1:2]
    V = proj[:, 2 * E:3 * E] + vecs[2:3]
    wo = w[:, 3 * E:4 * E]                                      # (E, E) out_proj weight

    # (M, E) -> (N, L, E): splits the sublane dim on an 8-row tile boundary.
    Q3 = Q.reshape(batch, seq_len, E)
    K3 = K.reshape(batch, seq_len, E)
    V3 = V.reshape(batch, seq_len, E)

    # Per-head attention, batched over N. Head concat is folded into out_proj by
    # accumulating O_h @ Wo[h*dh:(h+1)*dh, :] (no lane-axis concatenate, no scratch).
    att = jnp.zeros((M, E), jnp.float32)
    for h in range(num_heads):  # static unroll; heads live on the lane axis
        sl = slice(h * dh, (h + 1) * dh)
        S = jnp.einsum("nld,nmd->nlm", Q3[:, :, sl], K3[:, :, sl],
                       preferred_element_type=jnp.float32) * scale
        S = S - jnp.max(S, axis=-1, keepdims=True)
        P = jnp.exp(S)
        P = P * pl.reciprocal(jnp.sum(P, axis=-1, keepdims=True), approx=True)  # EUP
        Oh = jnp.einsum("nlm,nmd->nld", P, V3[:, :, sl],
                        preferred_element_type=jnp.float32)                     # (N, L, dh)
        att = att + jnp.dot(Oh.reshape(M, dh), wo[sl, :],
                            preferred_element_type=jnp.float32)                  # (M, E)

    # out_proj bias, dropout = identity (eval), residual + LayerNorm.
    # TODO(synk): train-mode dropout (PRNG masks) not implemented; eval semantics only.
    att = att + vecs[3:4]
    y = att + x
    mu = jnp.mean(y, axis=-1, keepdims=True)
    var = jnp.mean((y - mu) ** 2, axis=-1, keepdims=True)
    norm = (y - mu) * jax.lax.rsqrt(var + eps)
    o_ref[...] = norm * vecs[4:5] + vecs[5:6]


def attention_forward(x_lne, params, num_heads, eps=1e-5):
    """x_lne: (L, N, E) float32 (PyTorch MHA default layout). Returns (L, N, E)."""
    L, N, E = x_lne.shape
    M = N * L

    # --- Wrapper-side algebraic fusion of (outer Linear) ∘ (MHA in_proj) ---------------
    # Q = (x @ Wq.T + bq) @ Win_q.T + bin_q  ==  x @ (Win_q @ Wq).T + (Win_q @ bq + bin_q)
    hp = jax.lax.Precision.HIGHEST
    w_in, b_in = params["w_in"], params["b_in"]

    def fuse(w_outer, b_outer, w_inner, b_inner):
        w_eff = jnp.matmul(w_inner, w_outer, precision=hp)            # (E, E)
        b_eff = jnp.matmul(w_inner, b_outer, precision=hp) + b_inner  # (E,)
        return w_eff.T, b_eff                                         # pre-transposed: x @ W

    wq_t, bq_eff = fuse(params["wq"], params["bq"], w_in[0:E], b_in[0:E])
    wk_t, bk_eff = fuse(params["wk"], params["bk"], w_in[E:2 * E], b_in[E:2 * E])
    wv_t, bv_eff = fuse(params["wv"], params["bv"], w_in[2 * E:3 * E], b_in[2 * E:3 * E])
    wo_t = params["wo"].T

    # One (E, 4E) weight slab (lane-dense) + one (6, E) vector slab -> 3 kernel inputs.
    w_all = jnp.concatenate([wq_t, wk_t, wv_t, wo_t], axis=1)               # (E, 4E)
    vecs = jnp.stack([bq_eff, bk_eff, bv_eff,
                      params["bo"], params["gamma"], params["beta"]], axis=0)  # (6, E)

    # (L, N, E) -> (N*L, E): rows grouped by batch element (matches in-kernel reshape).
    x2d = jnp.transpose(x_lne, (1, 0, 2)).reshape(M, E)

    kernel = functools.partial(_attention_kernel, num_heads=num_heads,
                               batch=N, seq_len=L, eps=eps)

    vmem_spec = pl.BlockSpec(memory_space=pltpu.MemorySpace.VMEM)

    out2d = pl.pallas_call(
        kernel,
        out_shape=jax.ShapeDtypeStruct((M, E), jnp.float32),
        # No grid: single invocation, everything VMEM-resident (footprint ~25 KB, far
        # under the 32 MiB default scoped VMEM on all of v5e/v6e/v7x).
        in_specs=[vmem_spec, vmem_spec, vmem_spec],
        out_specs=vmem_spec,
    )(x2d, w_all, vecs)

    return jnp.transpose(out2d.reshape(N, L, E), (1, 0, 2))  # back to (L, N, E)


def reference_forward(x_lne, params, num_heads, eps=1e-5):
    """Plain-JAX reference with the original (unfused) math, for correctness check."""
    E = x_lne.shape[-1]
    dh = E // num_heads
    q = x_lne @ params["wq"].T + params["bq"]
    k = x_lne @ params["wk"].T + params["bk"]
    v = x_lne @ params["wv"].T + params["bv"]
    w_in, b_in = params["w_in"], params["b_in"]
    Q = q @ w_in[0:E].T + b_in[0:E]
    K = k @ w_in[E:2 * E].T + b_in[E:2 * E]
    V = v @ w_in[2 * E:3 * E].T + b_in[2 * E:3 * E]
    L, N, _ = x_lne.shape

    def heads(t):  # (L, N, E) -> (N, H, L, dh)
        return jnp.transpose(t.reshape(L, N, num_heads, dh), (1, 2, 0, 3))

    Qh, Kh, Vh = heads(Q), heads(K), heads(V)
    S = jnp.einsum("nhld,nhmd->nhlm", Qh, Kh) / (dh ** 0.5)
    P = jax.nn.softmax(S, axis=-1)
    O = jnp.einsum("nhlm,nhmd->nhld", P, Vh)             # (N, H, L, dh)
    O = jnp.transpose(O, (2, 0, 1, 3)).reshape(L, N, E)  # (L, N, E)
    att = O @ params["wo"].T + params["bo"]
    y = att + x_lne
    mu = jnp.mean(y, axis=-1, keepdims=True)
    var = jnp.mean((y - mu) ** 2, axis=-1, keepdims=True)
    return (y - mu) * jax.lax.rsqrt(var + eps) * params["gamma"] + params["beta"]


def make_params(key, embed_dim):
    E = embed_dim
    ks = jax.random.split(key, 8)
    s = 0.05
    return {
        "wq": s * jax.random.normal(ks[0], (E, E), jnp.float32),
        "bq": s * jax.random.normal(ks[1], (E,), jnp.float32),
        "wk": s * jax.random.normal(ks[2], (E, E), jnp.float32),
        "bk": s * jax.random.normal(ks[3], (E,), jnp.float32),
        "wv": s * jax.random.normal(ks[4], (E, E), jnp.float32),
        "bv": s * jax.random.normal(ks[5], (E,), jnp.float32),
        "w_in": s * jax.random.normal(ks[6], (3 * E, E), jnp.float32),
        "b_in": jnp.zeros((3 * E,), jnp.float32),
        "wo": s * jax.random.normal(ks[7], (E, E), jnp.float32),
        "bo": jnp.zeros((E,), jnp.float32),
        "gamma": jnp.ones((E,), jnp.float32),
        "beta": jnp.zeros((E,), jnp.float32),
    }


if __name__ == "__main__":
    embed_dim = 32
    num_heads = 4
    seq_len = 8
    batch = 2

    key = jax.random.PRNGKey(0)
    k_x, k_p = jax.random.split(key)
    x = jax.random.normal(k_x, (seq_len, batch, embed_dim), jnp.float32)  # (L, N, E)
    params = make_params(k_p, embed_dim)

    out = attention_forward(x, params, num_heads)
    out = jax.block_until_ready(out)

    ref = reference_forward(x, params, num_heads)
    assert out.shape == (seq_len, batch, embed_dim)
    # Tolerance accounts for wrapper-side weight fusion rounding and the EUP approx
    # reciprocal in softmax (rel err ~6e-5); outputs are O(1) after LayerNorm.
    assert jnp.allclose(out, ref, atol=1e-3, rtol=1e-3), "Pallas output mismatch vs reference"

    print("KERNEL_OK")
</pallas_src>

<mosaic_0001>
module attributes {stable_mosaic.version = 11 : i64} {
  func.func @_attention_kernel(%arg0: memref<16x32xf32, #tpu.memory_space<vmem>>, %arg1: memref<32x128xf32, #tpu.memory_space<vmem>>, %arg2: memref<6x32xf32, #tpu.memory_space<vmem>>, %arg3: memref<16x32xf32, #tpu.memory_space<vmem>>) attributes {dimension_semantics = [], scalar_prefetch = 0 : i64, scratch_operands = 0 : i64, tpu.core_type = #tpu.core_type<tc>} {
    %c0 = arith.constant 0 : index
    %c0_0 = arith.constant 0 : index
    %0 = vector.load %arg0[%c0, %c0_0] : memref<16x32xf32, #tpu.memory_space<vmem>>, vector<16x32xf32>
    %c0_1 = arith.constant 0 : index
    %c0_2 = arith.constant 0 : index
    %1 = vector.load %arg1[%c0_1, %c0_2] : memref<32x128xf32, #tpu.memory_space<vmem>>, vector<32x128xf32>
    %c0_3 = arith.constant 0 : index
    %c0_4 = arith.constant 0 : index
    %2 = vector.load %arg2[%c0_3, %c0_4] : memref<6x32xf32, #tpu.memory_space<vmem>>, vector<6x32xf32>
    %cst = arith.constant dense<0.000000e+00> : vector<16x128xf32>
    %3 = tpu.matmul %0, %1, %cst {dimension_numbers = #tpu.dot_dimension_numbers<[1], [0], [0], [1], [0, 0, 1, 1], [], []>} : vector<16x32xf32>, vector<32x128xf32>, vector<16x128xf32> -> vector<16x128xf32>
    %4 = vector.extract_strided_slice %3 {offsets = [0, 0], sizes = [16, 32], strides = [1, 1]} : vector<16x128xf32> to vector<16x32xf32>
    %5 = vector.extract_strided_slice %2 {offsets = [0, 0], sizes = [1, 32], strides = [1, 1]} : vector<6x32xf32> to vector<1x32xf32>
    %6 = vector.broadcast %5 : vector<1x32xf32> to vector<16x32xf32>
    %7 = arith.addf %4, %6 : vector<16x32xf32>
    %8 = vector.extract_strided_slice %3 {offsets = [0, 32], sizes = [16, 32], strides = [1, 1]} : vector<16x128xf32> to vector<16x32xf32>
    %9 = vector.extract_strided_slice %2 {offsets = [1, 0], sizes = [1, 32], strides = [1, 1]} : vector<6x32xf32> to vector<1x32xf32>
    %10 = vector.broadcast %9 : vector<1x32xf32> to vector<16x32xf32>
    %11 = arith.addf %8, %10 : vector<16x32xf32>
    %12 = vector.extract_strided_slice %3 {offsets = [0, 64], sizes = [16, 32], strides = [1, 1]} : vector<16x128xf32> to vector<16x32xf32>
    %13 = vector.extract_strided_slice %2 {offsets = [2, 0], sizes = [1, 32], strides = [1, 1]} : vector<6x32xf32> to vector<1x32xf32>
    %14 = vector.broadcast %13 : vector<1x32xf32> to vector<16x32xf32>
    %15 = arith.addf %12, %14 : vector<16x32xf32>
    %16 = vector.extract_strided_slice %1 {offsets = [0, 96], sizes = [32, 32], strides = [1, 1]} : vector<32x128xf32> to vector<32x32xf32>
    %17 = vector.shape_cast %7 : vector<16x32xf32> to vector<2x8x32xf32>
    %18 = vector.shape_cast %11 : vector<16x32xf32> to vector<2x8x32xf32>
    %19 = vector.shape_cast %15 : vector<16x32xf32> to vector<2x8x32xf32>
    %cst_5 = arith.constant 0.000000e+00 : f32
    %20 = vector.broadcast %cst_5 : f32 to vector<16x32xf32>
    %21 = vector.extract_strided_slice %17 {offsets = [0, 0, 0], sizes = [2, 8, 8], strides = [1, 1, 1]} : vector<2x8x32xf32> to vector<2x8x8xf32>
    %22 = vector.extract_strided_slice %18 {offsets = [0, 0, 0], sizes = [2, 8, 8], strides = [1, 1, 1]} : vector<2x8x32xf32> to vector<2x8x8xf32>
    "tpu.trace_start"() <{level = 10 : i32, message = "nld,nmd->nlm"}> : () -> ()
    %cst_6 = arith.constant dense<0.000000e+00> : vector<2x8x8xf32>
    %23 = tpu.matmul %21, %22, %cst_6 {dimension_numbers = #tpu.dot_dimension_numbers<[2], [2], [1], [1], [0, 0, 0, 1, 1, 1], [0], [0]>} : vector<2x8x8xf32>, vector<2x8x8xf32>, vector<2x8x8xf32> -> vector<2x8x8xf32>
    "tpu.trace_stop"() : () -> ()
    %cst_7 = arith.constant 0.353553385 : f32
    %24 = vector.broadcast %cst_7 : f32 to vector<2x8x8xf32>
    %25 = arith.mulf %23, %24 : vector<2x8x8xf32>
    %cst_8 = arith.constant dense<0xFF800000> : vector<2x8xf32>
    %26 = vector.multi_reduction <maximumf>, %25, %cst_8 [2] : vector<2x8x8xf32> to vector<2x8xf32>
    %27 = vector.shape_cast %26 : vector<2x8xf32> to vector<2x8x1xf32>
    %28 = vector.broadcast %27 : vector<2x8x1xf32> to vector<2x8x8xf32>
    %29 = arith.subf %25, %28 : vector<2x8x8xf32>
    %30 = math.exp %29 : vector<2x8x8xf32>
    %cst_9 = arith.constant dense<0.000000e+00> : vector<2x8xf32>
    %31 = vector.multi_reduction <add>, %30, %cst_9 [2] : vector<2x8x8xf32> to vector<2x8xf32>
    %32 = vector.shape_cast %31 : vector<2x8xf32> to vector<2x8x1xf32>
    %33 = tpu.reciprocal %32 {approx = true} : vector<2x8x1xf32> -> vector<2x8x1xf32>
    %34 = vector.broadcast %33 : vector<2x8x1xf32> to vector<2x8x8xf32>
    %35 = arith.mulf %30, %34 : vector<2x8x8xf32>
    %36 = vector.extract_strided_slice %19 {offsets = [0, 0, 0], sizes = [2, 8, 8], strides = [1, 1, 1]} : vector<2x8x32xf32> to vector<2x8x8xf32>
    "tpu.trace_start"() <{level = 10 : i32, message = "nlm,nmd->nld"}> : () -> ()
    %cst_10 = arith.constant dense<0.000000e+00> : vector<2x8x8xf32>
    %37 = tpu.matmul %35, %36, %cst_10 {dimension_numbers = #tpu.dot_dimension_numbers<[2], [1], [1], [2], [0, 0, 0, 1, 1, 2], [0], [0]>} : vector<2x8x8xf32>, vector<2x8x8xf32>, vector<2x8x8xf32> -> vector<2x8x8xf32>
    "tpu.trace_stop"() : () -> ()
    %38 = vector.shape_cast %37 : vector<2x8x8xf32> to vector<16x8xf32>
    %39 = vector.extract_strided_slice %16 {offsets = [0, 0], sizes = [8, 32], strides = [1, 1]} : vector<32x32xf32> to vector<8x32xf32>
    %cst_11 = arith.constant dense<0.000000e+00> : vector<16x32xf32>
    %40 = tpu.matmul %38, %39, %cst_11 {dimension_numbers = #tpu.dot_dimension_numbers<[1], [0], [0], [1], [0, 0, 1, 1], [], []>} : vector<16x8xf32>, vector<8x32xf32>, vector<16x32xf32> -> vector<16x32xf32>
    %41 = arith.addf %20, %40 : vector<16x32xf32>
    %42 = vector.extract_strided_slice %17 {offsets = [0, 0, 8], sizes = [2, 8, 8], strides = [1, 1, 1]} : vector<2x8x32xf32> to vector<2x8x8xf32>
    %43 = vector.extract_strided_slice %18 {offsets = [0, 0, 8], sizes = [2, 8, 8], strides = [1, 1, 1]} : vector<2x8x32xf32> to vector<2x8x8xf32>
    "tpu.trace_start"() <{level = 10 : i32, message = "nld,nmd->nlm"}> : () -> ()
    %cst_12 = arith.constant dense<0.000000e+00> : vector<2x8x8xf32>
    %44 = tpu.matmul %42, %43, %cst_12 {dimension_numbers = #tpu.dot_dimension_numbers<[2], [2], [1], [1], [0, 0, 0, 1, 1, 1], [0], [0]>} : vector<2x8x8xf32>, vector<2x8x8xf32>, vector<2x8x8xf32> -> vector<2x8x8xf32>
    "tpu.trace_stop"() : () -> ()
    %cst_13 = arith.constant 0.353553385 : f32
    %45 = vector.broadcast %cst_13 : f32 to vector<2x8x8xf32>
    %46 = arith.mulf %44, %45 : vector<2x8x8xf32>
    %cst_14 = arith.constant dense<0xFF800000> : vector<2x8xf32>
    %47 = vector.multi_reduction <maximumf>, %46, %cst_14 [2] : vector<2x8x8xf32> to vector<2x8xf32>
    %48 = vector.shape_cast %47 : vector<2x8xf32> to vector<2x8x1xf32>
    %49 = vector.broadcast %48 : vector<2x8x1xf32> to vector<2x8x8xf32>
    %50 = arith.subf %46, %49 : vector<2x8x8xf32>
    %51 = math.exp %50 : vector<2x8x8xf32>
    %cst_15 = arith.constant dense<0.000000e+00> : vector<2x8xf32>
    %52 = vector.multi_reduction <add>, %51, %cst_15 [2] : vector<2x8x8xf32> to vector<2x8xf32>
    %53 = vector.shape_cast %52 : vector<2x8xf32> to vector<2x8x1xf32>
    %54 = tpu.reciprocal %53 {approx = true} : vector<2x8x1xf32> -> vector<2x8x1xf32>
    %55 = vector.broadcast %54 : vector<2x8x1xf32> to vector<2x8x8xf32>
    %56 = arith.mulf %51, %55 : vector<2x8x8xf32>
    %57 = vector.extract_strided_slice %19 {offsets = [0, 0, 8], sizes = [2, 8, 8], strides = [1, 1, 1]} : vector<2x8x32xf32> to vector<2x8x8xf32>
    "tpu.trace_start"() <{level = 10 : i32, message = "nlm,nmd->nld"}> : () -> ()
    %cst_16 = arith.constant dense<0.000000e+00> : vector<2x8x8xf32>
    %58 = tpu.matmul %56, %57, %cst_16 {dimension_numbers = #tpu.dot_dimension_numbers<[2], [1], [1], [2], [0, 0, 0, 1, 1, 2], [0], [0]>} : vector<2x8x8xf32>, vector<2x8x8xf32>, vector<2x8x8xf32> -> vector<2x8x8xf32>
    "tpu.trace_stop"() : () -> ()
    %59 = vector.shape_cast %58 : vector<2x8x8xf32> to vector<16x8xf32>
    %60 = vector.extract_strided_slice %16 {offsets = [8, 0], sizes = [8, 32], strides = [1, 1]} : vector<32x32xf32> to vector<8x32xf32>
    %cst_17 = arith.constant dense<0.000000e+00> : vector<16x32xf32>
    %61 = tpu.matmul %59, %60, %cst_17 {dimension_numbers = #tpu.dot_dimension_numbers<[1], [0], [0], [1], [0, 0, 1, 1], [], []>} : vector<16x8xf32>, vector<8x32xf32>, vector<16x32xf32> -> vector<16x32xf32>
    %62 = arith.addf %41, %61 : vector<16x32xf32>
    %63 = vector.extract_strided_slice %17 {offsets = [0, 0, 16], sizes = [2, 8, 8], strides = [1, 1, 1]} : vector<2x8x32xf32> to vector<2x8x8xf32>
    %64 = vector.extract_strided_slice %18 {offsets = [0, 0, 16], sizes = [2, 8, 8], strides = [1, 1, 1]} : vector<2x8x32xf32> to vector<2x8x8xf32>
    "tpu.trace_start"() <{level = 10 : i32, message = "nld,nmd->nlm"}> : () -> ()
    %cst_18 = arith.constant dense<0.000000e+00> : vector<2x8x8xf32>
    %65 = tpu.matmul %63, %64, %cst_18 {dimension_numbers = #tpu.dot_dimension_numbers<[2], [2], [1], [1], [0, 0, 0, 1, 1, 1], [0], [0]>} : vector<2x8x8xf32>, vector<2x8x8xf32>, vector<2x8x8xf32> -> vector<2x8x8xf32>
    "tpu.trace_stop"() : () -> ()
    %cst_19 = arith.constant 0.353553385 : f32
    %66 = vector.broadcast %cst_19 : f32 to vector<2x8x8xf32>
    %67 = arith.mulf %65, %66 : vector<2x8x8xf32>
    %cst_20 = arith.constant dense<0xFF800000> : vector<2x8xf32>
    %68 = vector.multi_reduction <maximumf>, %67, %cst_20 [2] : vector<2x8x8xf32> to vector<2x8xf32>
    %69 = vector.shape_cast %68 : vector<2x8xf32> to vector<2x8x1xf32>
    %70 = vector.broadcast %69 : vector<2x8x1xf32> to vector<2x8x8xf32>
    %71 = arith.subf %67, %70 : vector<2x8x8xf32>
    %72 = math.exp %71 : vector<2x8x8xf32>
    %cst_21 = arith.constant dense<0.000000e+00> : vector<2x8xf32>
    %73 = vector.multi_reduction <add>, %72, %cst_21 [2] : vector<2x8x8xf32> to vector<2x8xf32>
    %74 = vector.shape_cast %73 : vector<2x8xf32> to vector<2x8x1xf32>
    %75 = tpu.reciprocal %74 {approx = true} : vector<2x8x1xf32> -> vector<2x8x1xf32>
    %76 = vector.broadcast %75 : vector<2x8x1xf32> to vector<2x8x8xf32>
    %77 = arith.mulf %72, %76 : vector<2x8x8xf32>
    %78 = vector.extract_strided_slice %19 {offsets = [0, 0, 16], sizes = [2, 8, 8], strides = [1, 1, 1]} : vector<2x8x32xf32> to vector<2x8x8xf32>
    "tpu.trace_start"() <{level = 10 : i32, message = "nlm,nmd->nld"}> : () -> ()
    %cst_22 = arith.constant dense<0.000000e+00> : vector<2x8x8xf32>
    %79 = tpu.matmul %77, %78, %cst_22 {dimension_numbers = #tpu.dot_dimension_numbers<[2], [1], [1], [2], [0, 0, 0, 1, 1, 2], [0], [0]>} : vector<2x8x8xf32>, vector<2x8x8xf32>, vector<2x8x8xf32> -> vector<2x8x8xf32>
    "tpu.trace_stop"() : () -> ()
    %80 = vector.shape_cast %79 : vector<2x8x8xf32> to vector<16x8xf32>
    %81 = vector.extract_strided_slice %16 {offsets = [16, 0], sizes = [8, 32], strides = [1, 1]} : vector<32x32xf32> to vector<8x32xf32>
    %cst_23 = arith.constant dense<0.000000e+00> : vector<16x32xf32>
    %82 = tpu.matmul %80, %81, %cst_23 {dimension_numbers = #tpu.dot_dimension_numbers<[1], [0], [0], [1], [0, 0, 1, 1], [], []>} : vector<16x8xf32>, vector<8x32xf32>, vector<16x32xf32> -> vector<16x32xf32>
    %83 = arith.addf %62, %82 : vector<16x32xf32>
    %84 = vector.extract_strided_slice %17 {offsets = [0, 0, 24], sizes = [2, 8, 8], strides = [1, 1, 1]} : vector<2x8x32xf32> to vector<2x8x8xf32>
    %85 = vector.extract_strided_slice %18 {offsets = [0, 0, 24], sizes = [2, 8, 8], strides = [1, 1, 1]} : vector<2x8x32xf32> to vector<2x8x8xf32>
    "tpu.trace_start"() <{level = 10 : i32, message = "nld,nmd->nlm"}> : () -> ()
    %cst_24 = arith.constant dense<0.000000e+00> : vector<2x8x8xf32>
    %86 = tpu.matmul %84, %85, %cst_24 {dimension_numbers = #tpu.dot_dimension_numbers<[2], [2], [1], [1], [0, 0, 0, 1, 1, 1], [0], [0]>} : vector<2x8x8xf32>, vector<2x8x8xf32>, vector<2x8x8xf32> -> vector<2x8x8xf32>
    "tpu.trace_stop"() : () -> ()
    %cst_25 = arith.constant 0.353553385 : f32
    %87 = vector.broadcast %cst_25 : f32 to vector<2x8x8xf32>
    %88 = arith.mulf %86, %87 : vector<2x8x8xf32>
    %cst_26 = arith.constant dense<0xFF800000> : vector<2x8xf32>
    %89 = vector.multi_reduction <maximumf>, %88, %cst_26 [2] : vector<2x8x8xf32> to vector<2x8xf32>
    %90 = vector.shape_cast %89 : vector<2x8xf32> to vector<2x8x1xf32>
    %91 = vector.broadcast %90 : vector<2x8x1xf32> to vector<2x8x8xf32>
    %92 = arith.subf %88, %91 : vector<2x8x8xf32>
    %93 = math.exp %92 : vector<2x8x8xf32>
    %cst_27 = arith.constant dense<0.000000e+00> : vector<2x8xf32>
    %94 = vector.multi_reduction <add>, %93, %cst_27 [2] : vector<2x8x8xf32> to vector<2x8xf32>
    %95 = vector.shape_cast %94 : vector<2x8xf32> to vector<2x8x1xf32>
    %96 = tpu.reciprocal %95 {approx = true} : vector<2x8x1xf32> -> vector<2x8x1xf32>
    %97 = vector.broadcast %96 : vector<2x8x1xf32> to vector<2x8x8xf32>
    %98 = arith.mulf %93, %97 : vector<2x8x8xf32>
    %99 = vector.extract_strided_slice %19 {offsets = [0, 0, 24], sizes = [2, 8, 8], strides = [1, 1, 1]} : vector<2x8x32xf32> to vector<2x8x8xf32>
    "tpu.trace_start"() <{level = 10 : i32, message = "nlm,nmd->nld"}> : () -> ()
    %cst_28 = arith.constant dense<0.000000e+00> : vector<2x8x8xf32>
    %100 = tpu.matmul %98, %99, %cst_28 {dimension_numbers = #tpu.dot_dimension_numbers<[2], [1], [1], [2], [0, 0, 0, 1, 1, 2], [0], [0]>} : vector<2x8x8xf32>, vector<2x8x8xf32>, vector<2x8x8xf32> -> vector<2x8x8xf32>
    "tpu.trace_stop"() : () -> ()
    %101 = vector.shape_cast %100 : vector<2x8x8xf32> to vector<16x8xf32>
    %102 = vector.extract_strided_slice %16 {offsets = [24, 0], sizes = [8, 32], strides = [1, 1]} : vector<32x32xf32> to vector<8x32xf32>
    %cst_29 = arith.constant dense<0.000000e+00> : vector<16x32xf32>
    %103 = tpu.matmul %101, %102, %cst_29 {dimension_numbers = #tpu.dot_dimension_numbers<[1], [0], [0], [1], [0, 0, 1, 1], [], []>} : vector<16x8xf32>, vector<8x32xf32>, vector<16x32xf32> -> vector<16x32xf32>
    %104 = arith.addf %83, %103 : vector<16x32xf32>
    %105 = vector.extract_strided_slice %2 {offsets = [3, 0], sizes = [1, 32], strides = [1, 1]} : vector<6x32xf32> to vector<1x32xf32>
    %106 = vector.broadcast %105 : vector<1x32xf32> to vector<16x32xf32>
    %107 = arith.addf %104, %106 : vector<16x32xf32>
    %108 = arith.addf %107, %0 : vector<16x32xf32>
    %cst_30 = arith.constant dense<0.000000e+00> : vector<16xf32>
    %109 = vector.multi_reduction <add>, %108, %cst_30 [1] : vector<16x32xf32> to vector<16xf32>
    %110 = vector.shape_cast %109 : vector<16xf32> to vector<16x1xf32>
    %cst_31 = arith.constant 3.200000e+01 : f32
    %111 = vector.broadcast %cst_31 : f32 to vector<16x1xf32>
    %112 = arith.divf %110, %111 : vector<16x1xf32>
    %113 = vector.broadcast %112 : vector<16x1xf32> to vector<16x32xf32>
    %114 = arith.subf %108, %113 : vector<16x32xf32>
    %115 = arith.mulf %114, %114 : vector<16x32xf32>
    %cst_32 = arith.constant dense<0.000000e+00> : vector<16xf32>
    %116 = vector.multi_reduction <add>, %115, %cst_32 [1] : vector<16x32xf32> to vector<16xf32>
    %117 = vector.shape_cast %116 : vector<16xf32> to vector<16x1xf32>
    %cst_33 = arith.constant 3.200000e+01 : f32
    %118 = vector.broadcast %cst_33 : f32 to vector<16x1xf32>
    %119 = arith.divf %117, %118 : vector<16x1xf32>
    %120 = vector.broadcast %112 : vector<16x1xf32> to vector<16x32xf32>
    %121 = arith.subf %108, %120 : vector<16x32xf32>
    %cst_34 = arith.constant 9.99999974E-6 : f32
    %122 = vector.broadcast %cst_34 : f32 to vector<16x1xf32>
    %123 = arith.addf %119, %122 : vector<16x1xf32>
    %124 = math.rsqrt %123 : vector<16x1xf32>
    %125 = vector.broadcast %124 : vector<16x1xf32> to vector<16x32xf32>
    %126 = arith.mulf %121, %125 : vector<16x32xf32>
    %127 = vector.extract_strided_slice %2 {offsets = [4, 0], sizes = [1, 32], strides = [1, 1]} : vector<6x32xf32> to vector<1x32xf32>
    %128 = vector.broadcast %127 : vector<1x32xf32> to vector<16x32xf32>
    %129 = arith.mulf %126, %128 : vector<16x32xf32>
    %130 = vector.extract_strided_slice %2 {offsets = [5, 0], sizes = [1, 32], strides = [1, 1]} : vector<6x32xf32> to vector<1x32xf32>
    %131 = vector.broadcast %130 : vector<1x32xf32> to vector<16x32xf32>
    %132 = arith.addf %129, %131 : vector<16x32xf32>
    %c0_35 = arith.constant 0 : index
    %c0_36 = arith.constant 0 : index
    %133 = vector.load %arg3[%c0_35, %c0_36] : memref<16x32xf32, #tpu.memory_space<vmem>>, vector<16x32xf32>
    tpu.vector_store %arg3[%c0_35, %c0_36], %132 {strides = array<i32>} : memref<16x32xf32, #tpu.memory_space<vmem>>, vector<16x32xf32>,
    return
  }
}

</mosaic_0001>

<bundles_post_ra>
// kernel: tpu_custom_call.1
= control target key start
LH: loop header
LB: loop body
LE: loop exit
PB: predicated region body
PF: predicated region fallthrough
CT: control target
= control target key end

     0   :  { %8 = vsyncpa [#allocation3], 0  ;;  %s1279_s0 = inlined_call_operand.hbm [shape: f32[16,32], index: 0, kind: input, shape index: {}]   ;;  %s1280_s1 = inlined_call_operand.hbm [shape: f32[32,128], index: 1, kind: input, shape index: {}]   ;;  %s1281_s2 = inlined_call_operand.hbm [shape: f32[6,32], index: 2, kind: input, shape index: {}]   ;;  %s1282_s3 = inlined_call_operand.hbm [shape: f32[16,32], index: 3, kind: output, shape index: {}]  }
   0x1   :  { %9 = vsyncpa [#allocation6], 0 }
   0x2   :  { %10 = vsyncpa [#allocation4], 0  ;;  %s28_s14 = sshll.u32 %s1280_s1, 4  ;;  %s1063_s15 = smov [#allocation5]   ;;  %s29_s14 = int_to_ptr.hbm [resolvable:$true] %s28_s14 }
   0x3   :  { %s30_s16 = sshll.u32 %s1063_s15, 4  ;;  %s15_s19 = sshll.u32 %s1279_s0, 4  ;;  %s31_s16 = int_to_ptr.vmem [resolvable:$true] %s30_s16  ;;  %s16_s19 = int_to_ptr.hbm [resolvable:$true] %s15_s19 }
   0x4   :  { %s1064_s20 = smov 128   ;;  %s1065_s21 = smov 8  }
   0x5   :  { %36 = dma.hbm_to_vmem [thread:$0]  %s29_s14, 512, %s31_s16, [#allocation6], %s1064_s20, %s1064_s20, %s1065_s21  }
   0x6   :  { %s1066_s22 = smov [#allocation2]   ;;  %s42_s1 = sshll.u32 %s1281_s2, 4  ;;  %s43_s1 = int_to_ptr.hbm [resolvable:$true] %s42_s1 }
   0x7   :  { %s17_s23 = sshll.u32 %s1066_s22, 4  ;;  %s1067_s0 = smov [#allocation7]   ;;  %s18_s23 = int_to_ptr.vmem [resolvable:$true] %s17_s23 }
   0x8   :  { %23 = dma.hbm_to_vmem [thread:$0]  %s16_s19, 256, %s18_s23, [#allocation3], %s1064_s20, %s1064_s20, %s1065_s21  }
   0x9   :  { %s44_s26 = sshll.u32 %s1067_s0, 4  ;;  %s45_s26 = int_to_ptr.vmem [resolvable:$true] %s44_s26 }
   0xa   :  { %47 = dma.hbm_to_vmem [thread:$0]  %s43_s1, 128, %s45_s26, [#allocation6]  }
   0xb   :  { %1057 = dma.done.wait [#allocation3], 256  }
   0xc   :  { %1058 = vsyncadd [#allocation3], 4294967040 }
   0xd   :  { %1059 = dma.done.wait [#allocation6], 640  }
   0xe   :  { %1060 = vsyncadd [#allocation6], 4294966656  ;;  %v1117_v0 = vld [vmem:[#allocation5 + $0x18] sm:$0xff]  ;;  %v1119_v1 = vld [vmem:[#allocation5 + $0x10] sm:$0xff]  ;;  %vm67_vm0 = vcmask 261120   ;;  %s1068_s2 = smov 32  }
   0xf   :  { %86 = vmatpush.msra.mxu0 %v1117_v0  ;;  %v918_v2 = vpack.i.bf16 %v1117_v0, %v1119_v1  ;;  %v1124_v3 = vld [vmem:[#allocation5 + $0x8] sm:$0xff]  ;;  %v1126_v4 = vld [vmem:[#allocation7] sm:$0x3f]  ;;  %v1133_v7 = vld [vmem:[#allocation2] sm:$0xff]  ;;  %s1069_s27 = smov 96   ;;  %vm117_vm1 = vcmask 64512  }
  0x10   :  { %v100_v5 = vperm.slane %v1126_v4, 1  ;;  %v1130_v6 = vld [vmem:[#allocation5] sm:$0xff]  ;;  %v1139_v8 = vld [vmem:[#allocation2 + $0x8] sm:$0xff]  ;;  %v97_v12 = vperm.slane %v1126_v4, 0  ;;  %v107_v18 = vperm.slane %v1126_v4, 2  ;;  %s1070_s28 = smov 64  }
  0x11   :  { %87 = vmatpush.msra.mxu0 %v1119_v1  ;;  %s1071_s29 = smov 88   ;;  %s1072_s30 = smov 120  }
  0x12   :  { %102 = vrot.lane.b32.xlu0 %v100_v5, %s1068_s2  ;;  %s1073_s4 = smov 56   ;;  %s1074_s5 = smov 80  }
  0x13   :  { %88 = vmatpush.msra.mxu0 %v1124_v3  ;;  %s1075_s6 = smov 112   ;;  %s1076_s7 = smov 48  }
  0x14   :  { %s1077_s8 = smov 72   ;;  %s1078_s9 = smov 104  }
  0x15   :  { %89 = vmatpush.msra.mxu0 %v1130_v6  ;;  %s1079_s10 = smov 40   ;;  %s1081_s11 = smov [#allocation8]  }
  0x16   :  { %865 = vmatmul.msk.f32.vlgmr.msra.gmra.mxu0 %vm67_vm0, %v1133_v7  ;;  %s849_s12 = sshll.u32 %s1081_s11, 4  ;;  %s851_s15 = sshll.u32 %s1282_s3, 4  ;;  %s850_s12 = int_to_ptr.vmem [resolvable:$true] %s849_s12  ;;  %s852_s15 = int_to_ptr.hbm [resolvable:$true] %s851_s15 }
  0x1e   :  { %866 = vmatmul.msk.f32.gmra.mxu0 %vm67_vm0, %v1139_v8 }
  0x84   :  { %v103_v9 = vpop.permute.xlu0 %102 }
  0x93   :  { %v91_v10 = vpop.f32.mrf.mxu0 }
  0x94   :  { %v1143_v11 = vadd.f32 %v103_v9, %v91_v10  ;;  %v1148_v14 = vadd.f32 %v97_v12, %v91_v10 }
  0x96   :  { %115 = vrot.lane.b32.xlu0 %v1143_v11, %s1069_s27 }
  0x9b   :  { %v94_v26 = vpop.f32.mrf.mxu0 }
  0x9c   :  { %v1160_v27 = vadd.f32 %v103_v9, %v94_v26  ;;  %v1167_v31 = vadd.f32 %v97_v12, %v94_v26 }
 0x108   :  { %v116_v13 = vpop.permute.xlu0 %115 }
 0x109   :  { %867 = vmatpush.xpose.msk.msra.mxu1 %vm117_vm1, %v116_v13 }
 0x10c   :  { %868 = vmatmul.msk.f32.vlgmr.msra.gmra.mxu1 %vm117_vm1, %v1148_v14 }
 0x189   :  { %v140_v15 = vpop.f32.mrf.mxu1 }
 0x18a   :  { %v171_v16 = vmul.f32 0.35355338, %v140_v15 }
 0x18c   :  { %v173_v17 = vsel %vm117_vm1, %v171_v16, -inf }
 0x18d   :  { %174 = vmax.xlane.f32.xlu1 %v173_v17 }
 0x1a6   :  { %109 = vrot.lane.b32.xlu1 %v107_v18, %s1070_s28 }
 0x200   :  { %v175_v19 = vpop.xlane.xlu1 %174 }
 0x201   :  { %v179_v20 = vsub.f32 %v171_v16, %v175_v19 }
 0x203   :  { %v181_v21 = vmul.f32 1.442695, %v179_v20 }
 0x205   :  { %923 = vpow2.f32 %v181_v21 }
 0x20b   :  { %v924_v22 = vpop.eup %923 }
 0x20c   :  { %v185_v23 = vsel %vm117_vm1, %v924_v22, 0.0 }
 0x20d   :  { %186 = vadd.xlane.f32.xlu2 %v185_v23 }
 0x218   :  { %v110_v24 = vpop.permute.xlu1 %109 }
 0x219   :  { %v1156_v25 = vadd.f32 %v110_v24, %v91_v10  ;;  %v1179_v43 = vadd.f32 %v110_v24, %v94_v26 }
 0x21b   :  { %196 = vrot.lane.b32.xlu0 %v1156_v25, %s1070_s28 }
 0x223   :  { %251 = vrot.lane.b32.xlu0 %v1143_v11, %s1071_s29 }
 0x225   :  { %144 = vrot.lane.b32.xlu2 %v1160_v27, %s1069_s27 }
 0x22b   :  { %249 = vrot.lane.b32.xlu0 %v1148_v14, %s1072_s30 }
 0x280   :  { %v187_v28 = vpop.xlane.xlu2 %186 }
 0x281   :  { %925 = vrcp.f32 %v187_v28 }
 0x287   :  { %v926_v30 = vpop.eup %925 }
 0x288   :  { %v145_v29 = vpop.permute.xlu2 %144  ;;  %v193_v33 = vmul.f32 %v926_v30, %v924_v22 }
 0x289   :  { %869 = vmatpush.xpose.msk.msra.mxu2 %vm117_vm1, %v145_v29 }
 0x28c   :  { %870 = vmatmul.msk.f32.vlgmr.msra.gmra.mxu2 %vm117_vm1, %v1167_v31 }
 0x28d   :  { %v197_v32 = vpop.permute.xlu0 %196 }
 0x28e   :  { %217 = vmatpush.msrb.mxu1 %v197_v32 }
 0x28f   :  { %871 = vmatmul.msk.f32.vlgmr.msrb.gmra.mxu1 %vm117_vm1, %v193_v33 }
 0x295   :  { %v252_v34 = vpop.permute.xlu0 %251 }
 0x296   :  { %873 = vmatpush.xpose.msk.msra.mxu1 %vm117_vm1, %v252_v34 }
 0x29d   :  { %v250_v35 = vpop.permute.xlu0 %249 }
 0x29e   :  { %874 = vmatmul.msk.f32.vlgmr.msra.gmra.mxu1 %vm117_vm1, %v250_v35 }
 0x30c   :  { %v1175_v39 = vpop.f32.mrf.mxu1 }
 0x30f   :  { %v168_v36 = vpop.f32.mrf.mxu2 }
 0x310   :  { %v172_v37 = vmul.f32 0.35355338, %v168_v36 }
 0x312   :  { %v176_v38 = vsel %vm117_vm1, %v172_v37, -inf }
 0x313   :  { %177 = vmax.xlane.f32.xlu2 %v176_v38 }
 0x31b   :  { %v274_v40 = vpop.f32.mrf.mxu1 }
 0x31c   :  { %v305_v41 = vmul.f32 0.35355338, %v274_v40 }
 0x31e   :  { %v307_v42 = vsel %vm117_vm1, %v305_v41, -inf }
 0x31f   :  { %308 = vmax.xlane.f32.xlu1 %v307_v42 }
 0x32b   :  { %279 = vrot.lane.b32.xlu2 %v1160_v27, %s1071_s29 }
 0x338   :  { %223 = vrot.lane.b32.xlu1 %v1179_v43, %s1070_s28 }
 0x340   :  { %329 = vrot.lane.b32.xlu1 %v1156_v25, %s1073_s4 }
 0x386   :  { %v178_v44 = vpop.xlane.xlu2 %177 }
 0x387   :  { %v180_v45 = vsub.f32 %v172_v37, %v178_v44 }
 0x389   :  { %v183_v46 = vmul.f32 1.442695, %v180_v45 }
 0x38b   :  { %927 = vpow2.f32 %v183_v46 }
 0x38e   :  { %v280_v47 = vpop.permute.xlu2 %279 }
 0x38f   :  { %875 = vmatpush.xpose.msk.msrb.mxu2 %vm117_vm1, %v280_v47 }
 0x391   :  { %v928_v48 = vpop.eup %927 }
 0x392   :  { %v309_v49 = vpop.xlane.xlu1 %308  ;;  %v188_v50 = vsel %vm117_vm1, %v928_v48, 0.0 }
 0x393   :  { %v313_v51 = vsub.f32 %v305_v41, %v309_v49  ;;  %189 = vadd.xlane.f32.xlu0 %v188_v50 }
 0x395   :  { %v315_v52 = vmul.f32 1.442695, %v313_v51 }
 0x397   :  { %929 = vpow2.f32 %v315_v52 }
 0x39d   :  { %v930_v53 = vpop.eup %929 }
 0x39e   :  { %v319_v54 = vsel %vm117_vm1, %v930_v53, 0.0 }
 0x39f   :  { %320 = vadd.xlane.f32.xlu2 %v319_v54 }
 0x3a7   :  { %277 = vrot.lane.b32.xlu0 %v1167_v31, %s1072_s30 }
 0x3aa   :  { %v224_v55 = vpop.permute.xlu1 %223 }
 0x3ab   :  { %244 = vmatpush.msra.mxu3 %v224_v55 }
 0x3af   :  { %449 = vrot.lane.b32.xlu0 %v1143_v11, %s1074_s5 }
 0x3b2   :  { %v330_v56 = vpop.permute.xlu1 %329 }
 0x3b3   :  { %350 = vmatpush.msrb.mxu3 %v330_v56 }
 0x3b7   :  { %447 = vrot.lane.b32.xlu2 %v1148_v14, %s1075_s6 }
 0x406   :  { %v190_v57 = vpop.xlane.xlu0 %189 }
 0x407   :  { %931 = vrcp.f32 %v190_v57 }
 0x40d   :  { %v932_v58 = vpop.eup %931 }
 0x40e   :  { %v194_v59 = vmul.f32 %v932_v58, %v928_v48 }
 0x410   :  { %872 = vmatmul.msk.f32.vlgmr.msra.gmra.mxu3 %vm117_vm1, %v194_v59 }
 0x412   :  { %v321_v60 = vpop.xlane.xlu2 %320 }
 0x413   :  { %933 = vrcp.f32 %v321_v60 }
 0x419   :  { %v934_v61 = vpop.eup %933  ;;  %v278_v62 = vpop.permute.xlu0 %277 }
 0x41a   :  { %876 = vmatmul.msk.f32.vlgmr.msrb.gmra.mxu2 %vm117_vm1, %v278_v62  ;;  %v327_v63 = vmul.f32 %v934_v61, %v930_v53  ;;  %v448_v9 = vpop.permute.xlu2 %447 }
 0x41c   :  { %877 = vmatmul.msk.f32.vlgmr.msrb.gmra.mxu3 %vm117_vm1, %v327_v63 }
 0x421   :  { %v450_v5 = vpop.permute.xlu0 %449 }
 0x422   :  { %883 = vmatpush.xpose.msk.msra.mxu3 %vm117_vm1, %v450_v5 }
 0x425   :  { %884 = vmatmul.msk.f32.vlgmr.msra.gmra.mxu3 %vm117_vm1, %v448_v9 }
 0x493   :  { %v246_v10 = vpop.f32.mrf.mxu3 }
 0x49d   :  { %v302_v12 = vpop.f32.mrf.mxu2 }
 0x49e   :  { %v306_v13 = vmul.f32 0.35355338, %v302_v12 }
 0x49f   :  { %v1199_v15 = vpop.f32.mrf.mxu3 }
 0x4a0   :  { %v310_v16 = vsel %vm117_vm1, %v306_v13, -inf }
 0x4a1   :  { %311 = vmax.xlane.f32.xlu1 %v310_v16 }
 0x4a8   :  { %v472_v17 = vpop.f32.mrf.mxu3 }
 0x4a9   :  { %v503_v18 = vmul.f32 0.35355338, %v472_v17 }
 0x4ab   :  { %v505_v19 = vsel %vm117_vm1, %v503_v18, -inf }
 0x4ac   :  { %506 = vmax.xlane.f32.xlu0 %v505_v19 }
 0x4ba   :  { %355 = vrot.lane.b32.xlu1 %v1179_v43, %s1073_s4 }
 0x4c0   :  { %415 = vrot.lane.b32.xlu0 %v1130_v6, %s1068_s2 }
 0x4c2   :  { %527 = vrot.lane.b32.xlu1 %v1156_v25, %s1076_s7 }
 0x4c8   :  { %475 = vrot.lane.b32.xlu0 %v1167_v31, %s1075_s6 }
 0x4ca   :  { %644 = vrot.lane.b32.xlu1 %v1160_v27, %s1077_s8 }
 0x4d0   :  { %616 = vrot.lane.b32.xlu0 %v1143_v11, %s1077_s8 }
 0x4d8   :  { %642 = vrot.lane.b32.xlu0 %v1167_v31, %s1078_s9 }
 0x514   :  { %v312_v20 = vpop.xlane.xlu1 %311 }
 0x515   :  { %v314_v21 = vsub.f32 %v306_v13, %v312_v20 }
 0x517   :  { %v317_v22 = vmul.f32 1.442695, %v314_v21 }
 0x519   :  { %935 = vpow2.f32 %v317_v22 }
 0x51f   :  { %v936_v6 = vpop.eup %935  ;;  %v507_v24 = vpop.xlane.xlu0 %506 }
 0x520   :  { %v322_v23 = vsel %vm117_vm1, %v936_v6, 0.0  ;;  %v511_v32 = vsub.f32 %v503_v18, %v507_v24 }
 0x521   :  { %323 = vadd.xlane.f32.xlu2 %v322_v23 }
 0x522   :  { %v513_v33 = vmul.f32 1.442695, %v511_v32 }
 0x524   :  { %937 = vpow2.f32 %v513_v33 }
 0x52a   :  { %v938_v34 = vpop.eup %937 }
 0x52b   :  { %v517_v35 = vsel %vm117_vm1, %v938_v34, 0.0 }
 0x52c   :  { %v356_v26 = vpop.permute.xlu1 %355 }
 0x52d   :  { %376 = vmatpush.msrb.mxu1 %v356_v26 }
 0x532   :  { %v416_v28 = vpop.permute.xlu0 %415 }
 0x533   :  { %439 = vmatpush.msrb.mxu0 %v416_v28 }
 0x534   :  { %v528_v29 = vpop.permute.xlu1 %527  ;;  %881 = vmatmul.msk.f32.vlgmr.msrb.gmra.mxu0 %vm117_vm1, %v1175_v39 }
 0x535   :  { %548 = vmatpush.msrb.mxu3 %v528_v29 }
 0x539   :  { %477 = vrot.lane.b32.xlu2 %v1160_v27, %s1074_s5 }
 0x53a   :  { %v476_v11 = vpop.permute.xlu0 %475 }
 0x53c   :  { %v645_v30 = vpop.permute.xlu1 %644  ;;  %882 = vmatmul.msk.f32.gmra.mxu0 %vm117_vm1, %v246_v10 }
 0x53d   :  { %893 = vmatpush.xpose.msk.msra.mxu3 %vm117_vm1, %v645_v30 }
 0x542   :  { %v617_v31 = vpop.permute.xlu0 %616 }
 0x543   :  { %891 = vmatpush.xpose.msk.msra.mxu0 %vm117_vm1, %v617_v31 }
 0x562   :  { %518 = vadd.xlane.f32.xlu2 %v517_v35 }
 0x57a   :  { %614 = vrot.lane.b32.xlu2 %v1148_v14, %s1078_s9  ;;  %v643_v14 = vpop.permute.xlu0 %642 }
 0x594   :  { %v324_v36 = vpop.xlane.xlu2 %323 }
 0x595   :  { %939 = vrcp.f32 %v324_v36  ;;  %v781_v36 = vperm.slane %v1126_v4, 3 }
 0x59b   :  { %v940_v27 = vpop.eup %939 }
 0x59c   :  { %v328_v37 = vmul.f32 %v940_v27, %v936_v6  ;;  %v478_v38 = vpop.permute.xlu2 %477 }
 0x59d   :  { %885 = vmatpush.xpose.msk.msra.mxu1 %vm117_vm1, %v478_v38 }
 0x59e   :  { %878 = vmatmul.msk.f32.vlgmr.msrb.gmra.mxu1 %vm117_vm1, %v328_v37 }
 0x5a6   :  { %886 = vmatmul.msk.f32.vlgmr.msra.gmra.mxu1 %vm117_vm1, %v476_v11 }
 0x5b1   :  { %v1231_v48 = vpop.f32.mrf.mxu0 }
 0x5b9   :  { %v1233_v49 = vpop.f32.mrf.mxu0 }
 0x5d5   :  { %v519_v39 = vpop.xlane.xlu2 %518 }
 0x5d6   :  { %941 = vrcp.f32 %v519_v39 }
 0x5dc   :  { %v942_v40 = vpop.eup %941 }
 0x5dd   :  { %v525_v41 = vmul.f32 %v942_v40, %v938_v34  ;;  %v615_v42 = vpop.permute.xlu2 %614 }
 0x5de   :  { %892 = vmatmul.msk.f32.vlgmr.msra.gmra.mxu0 %vm117_vm1, %v615_v42 }
 0x5df   :  { %887 = vmatmul.msk.f32.vlgmr.msrb.gmra.mxu3 %vm117_vm1, %v525_v41 }
 0x5e7   :  { %894 = vmatmul.msk.f32.vlgmr.msra.gmra.mxu3 %vm117_vm1, %v643_v14 }
 0x61b   :  { %v378_v44 = vpop.f32.mrf.mxu1 }
 0x623   :  { %v500_v45 = vpop.f32.mrf.mxu1 }
 0x624   :  { %v504_v46 = vmul.f32 0.35355338, %v500_v45 }
 0x626   :  { %v508_v47 = vsel %vm117_vm1, %v504_v46, -inf }
 0x627   :  { %509 = vmax.xlane.f32.xlu1 %v508_v47 }
 0x65b   :  { %v639_v50 = vpop.f32.mrf.mxu0 }
 0x65c   :  { %v670_v51 = vmul.f32 0.35355338, %v639_v50  ;;  %v1080_v50 = vmov 32.0  }
 0x65e   :  { %v672_v52 = vsel %vm117_vm1, %v670_v51, -inf }
 0x65f   :  { %673 = vmax.xlane.f32.xlu2 %v672_v52 }
 0x662   :  { %v550_v53 = vpop.f32.mrf.mxu3 }
 0x66a   :  { %v667_v54 = vpop.f32.mrf.mxu3 }
 0x66b   :  { %v671_v55 = vmul.f32 0.35355338, %v667_v54 }
 0x66d   :  { %v675_v56 = vsel %vm117_vm1, %v671_v55, -inf }
 0x66e   :  { %676 = vmax.xlane.f32.xlu0 %v675_v56 }
 0x682   :  { %553 = vrot.lane.b32.xlu0 %v1179_v43, %s1076_s7 }
 0x68a   :  { %382 = vrot.lane.b32.xlu0 %v1124_v3, %s1068_s2 }
 0x692   :  { %919 = vrot.lane.b32.xlu0 %v918_v2, %s1068_s2 }
 0x69a   :  { %v510_v57 = vpop.xlane.xlu1 %509 }
 0x69b   :  { %v512_v58 = vsub.f32 %v504_v46, %v510_v57 }
 0x69d   :  { %v515_v59 = vmul.f32 1.442695, %v512_v58 }
 0x69f   :  { %943 = vpow2.f32 %v515_v59 }
 0x6a5   :  { %v944_v60 = vpop.eup %943 }
 0x6a6   :  { %v520_v61 = vsel %vm117_vm1, %v944_v60, 0.0 }
 0x6a7   :  { %521 = vadd.xlane.f32.xlu1 %v520_v61 }
 0x6d2   :  { %v674_v62 = vpop.xlane.xlu2 %673 }
 0x6d3   :  { %v678_v63 = vsub.f32 %v670_v51, %v674_v62 }
 0x6d5   :  { %v680_v5 = vmul.f32 1.442695, %v678_v63 }
 0x6d7   :  { %945 = vpow2.f32 %v680_v5 }
 0x6dd   :  { %v946_v9 = vpop.eup %945 }
 0x6de   :  { %v684_v3 = vsel %vm117_vm1, %v946_v9, 0.0 }
 0x6df   :  { %685 = vadd.xlane.f32.xlu2 %v684_v3 }
 0x6e1   :  { %v677_v10 = vpop.xlane.xlu0 %676 }
 0x6e2   :  { %v679_v12 = vsub.f32 %v671_v55, %v677_v10 }
 0x6e4   :  { %v682_v0 = vmul.f32 1.442695, %v679_v12 }
 0x6e6   :  { %947 = vpow2.f32 %v682_v0 }
 0x6ec   :  { %v948_v1 = vpop.eup %947 }
 0x6ed   :  { %v687_v2 = vsel %vm117_vm1, %v948_v1, 0.0 }
 0x6ee   :  { %688 = vadd.xlane.f32.xlu1 %v687_v2 }
 0x6f4   :  { %v554_v13 = vpop.permute.xlu0 %553 }
 0x6f5   :  { %574 = vmatpush.msrb.mxu1 %v554_v13 }
 0x6f7   :  { %694 = vrot.lane.b32.xlu2 %v1156_v25, %s1079_s10 }
 0x6fc   :  { %v383_v16 = vpop.permute.xlu0 %382 }
 0x6fd   :  { %406 = vmatpush.msra.mxu2 %v383_v16  ;;  %v837_v16 = vperm.slane %v1126_v4, 4 }
 0x6fe   :  { %879 = vmatmul.msk.f32.vlgmr.msra.gmra.mxu2 %vm117_vm1, %v1199_v15 }
 0x704   :  { %v920_v17 = vpop.permute.xlu0 %919 }
 0x705   :  { %v922_v18 = vunpack.i.h.bf16 %v920_v17  ;;  %v921_v19 = vunpack.i.l.bf16 %v920_v17 }
 0x706   :  { %880 = vmatmul.msk.f32.gmra.mxu2 %vm117_vm1, %v378_v44 }
 0x707   :  { %720 = vrot.lane.b32.xlu1 %v1179_v43, %s1079_s10  ;;  %604 = vmatpush.msrb.mxu2 %v921_v19  ;;  %v840_v19 = vperm.slane %v1126_v4, 5 }
 0x708   :  { %771 = vmatpush.msrb.mxu3 %v922_v18 }
 0x70e   :  { %889 = vmatmul.msk.f32.vlgmr.msrb.gmra.mxu2 %vm117_vm1, %v550_v53 }
 0x71a   :  { %v522_v20 = vpop.xlane.xlu1 %521 }
 0x71b   :  { %949 = vrcp.f32 %v522_v20 }
 0x721   :  { %v950_v21 = vpop.eup %949 }
 0x722   :  { %v526_v25 = vmul.f32 %v950_v21, %v944_v60 }
 0x724   :  { %888 = vmatmul.msk.f32.vlgmr.msrb.gmra.mxu1 %vm117_vm1, %v526_v25 }
 0x752   :  { %v686_v22 = vpop.xlane.xlu2 %685 }
 0x753   :  { %951 = vrcp.f32 %v686_v22 }
 0x759   :  { %v952_v15 = vpop.eup %951 }
 0x75a   :  { %v692_v6 = vmul.f32 %v952_v15, %v946_v9  ;;  %v695_v23 = vpop.permute.xlu2 %694 }
 0x75b   :  { %715 = vmatpush.msra.mxu1 %v695_v23 }
 0x75c   :  { %895 = vmatmul.msk.f32.vlgmr.msra.gmra.mxu1 %vm117_vm1, %v692_v6 }
 0x761   :  { %v689_v24 = vpop.xlane.xlu1 %688 }
 0x762   :  { %953 = vrcp.f32 %v689_v24 }
 0x763   :  { %955 = vrcp.f32 %v1080_v50 }
 0x768   :  { %v954_v43 = vpop.eup %953 }
 0x769   :  { %v693_v26 = vmul.f32 %v954_v43, %v948_v1  ;;  %v956_v51 = vpop.eup %955 }
 0x76a   :  { %v793_v52 = vmul.f32 32.0, %v956_v51  ;;  %vm797_vm2 = vweird.f32 %v956_v51 }
 0x779   :  { %v721_v28 = vpop.permute.xlu1 %720 }
 0x77a   :  { %741 = vmatpush.msrb.mxu0 %v721_v28 }
 0x77b   :  { %896 = vmatmul.msk.f32.vlgmr.msrb.gmra.mxu0 %vm117_vm1, %v693_v26 }
 0x781   :  { %v408_v31 = vpop.f32.mrf.mxu2 }
 0x782   :  { %v442_v34 = vadd.f32 %v1231_v48, %v408_v31 }
 0x789   :  { %v411_v32 = vpop.f32.mrf.mxu2 }
 0x78a   :  { %v445_v42 = vadd.f32 %v1233_v49, %v411_v32 }
 0x791   :  { %v606_v33 = vpop.f32.mrf.mxu2 }
 0x792   :  { %v612_v35 = vadd.f32 %v606_v33, %v442_v34 }
 0x7a1   :  { %v576_v29 = vpop.f32.mrf.mxu1 }
 0x7a2   :  { %890 = vmatmul.msk.f32.gmra.mxu2 %vm117_vm1, %v576_v29 }
 0x7d9   :  { %v717_v11 = vpop.f32.mrf.mxu1 }
 0x7da   :  { %897 = vmatmul.msk.f32.vlgmr.msrb.gmra.mxu3 %vm117_vm1, %v717_v11 }
 0x7f8   :  { %v743_v30 = vpop.f32.mrf.mxu0 }
 0x7f9   :  { %898 = vmatmul.msk.f32.gmra.mxu3 %vm117_vm1, %v743_v30 }
 0x825   :  { %v609_v41 = vpop.f32.mrf.mxu2 }
 0x826   :  { %v613_v14 = vadd.f32 %v609_v41, %v445_v42 }
 0x85d   :  { %v773_v27 = vpop.f32.mrf.mxu3 }
 0x85e   :  { %v779_v37 = vadd.f32 %v773_v27, %v612_v35 }
 0x860   :  { %v782_v38 = vadd.f32 %v781_v36, %v779_v37 }
 0x862   :  { %v784_v39 = vadd.f32 %v782_v38, %v1133_v7  ;;  %v794_v7 = vsub.f32 1.0, %v793_v52 }
 0x864   :  { %v786_v40 = vsel %vm67_vm0, %v784_v39, 0.0  ;;  %v795_v53 = vmul.f32 %v956_v51, %v794_v7 }
 0x865   :  { %787 = vadd.xlane.f32.xlu2 %v786_v40 }
 0x866   :  { %v796_v54 = vadd.f32 %v956_v51, %v795_v53 }
 0x868   :  { %v798_v55 = vsel %vm797_vm2, %v956_v51, %v796_v54 }
 0x87c   :  { %v776_v44 = vpop.f32.mrf.mxu3 }
 0x87d   :  { %v780_v45 = vadd.f32 %v776_v44, %v613_v14 }
 0x87f   :  { %v783_v46 = vadd.f32 %v781_v36, %v780_v45 }
 0x881   :  { %v785_v47 = vadd.f32 %v783_v46, %v1139_v8 }
 0x883   :  { %v789_v48 = vsel %vm67_vm0, %v785_v47, 0.0 }
 0x884   :  { %790 = vadd.xlane.f32.xlu0 %v789_v48 }
 0x8d8   :  { %v788_v56 = vpop.xlane.xlu2 %787 }
 0x8d9   :  { %v799_v49 = vmul.f32 %v798_v55, %v788_v56 }
 0x8db   :  { %v801_v57 = vsub.f32 %v784_v39, %v799_v49 }
 0x8dd   :  { %v803_v58 = vmul.f32 %v801_v57, %v801_v57 }
 0x8df   :  { %v805_v59 = vsel %vm67_vm0, %v803_v58, 0.0 }
 0x8e0   :  { %806 = vadd.xlane.f32.xlu1 %v805_v59 }
 0x8f7   :  { %v791_v8 = vpop.xlane.xlu0 %790 }
 0x8f8   :  { %v800_v60 = vmul.f32 %v798_v55, %v791_v8 }
 0x8fa   :  { %v802_v61 = vsub.f32 %v785_v47, %v800_v60 }
 0x8fc   :  { %v804_v62 = vmul.f32 %v802_v61, %v802_v61 }
 0x8fe   :  { %v808_v63 = vsel %vm67_vm0, %v804_v62, 0.0 }
 0x8ff   :  { %809 = vadd.xlane.f32.xlu2 %v808_v63 }
 0x953   :  { %v807_v5 = vpop.xlane.xlu1 %806 }
 0x954   :  { %v811_v9 = vmul.f32 %v807_v5, %v798_v55 }
 0x956   :  { %v813_v3 = vadd.f32 1e-05, %v811_v9 }
 0x958   :  { %957 = vrsqrt.f32 %v813_v3  ;;  %vm821_vm4 = vweird.f32 %v813_v3 }
 0x95e   :  { %v958_v10 = vpop.eup %957 }
 0x95f   :  { %v816_v12 = vmul.f32 %v958_v10, %v813_v3  ;;  %vm822_vm3 = vweird.f32 %v958_v10 }
 0x960   :  { %vm823_vm5 = vmor %vm821_vm4, %vm822_vm3 }
 0x961   :  { %v817_v0 = vmul.f32 %v958_v10, %v816_v12 }
 0x963   :  { %v818_v1 = vmul.f32 0.5, %v817_v0 }
 0x965   :  { %v819_v2 = vsub.f32 1.5, %v818_v1 }
 0x967   :  { %v820_v13 = vmul.f32 %v958_v10, %v819_v2 }
 0x969   :  { %v824_v17 = vsel %vm823_vm5, %v958_v10, %v820_v13 }
 0x96a   :  { %v835_v18 = vmul.f32 %v824_v17, %v801_v57 }
 0x96c   :  { %v838_v20 = vmul.f32 %v837_v16, %v835_v18 }
 0x96e   :  { %v841_v21 = vadd.f32 %v840_v19, %v838_v20 }
 0x970   :  { %843 = vst.msk [vmem:[#allocation8] sm:$0xff] %vm67_vm0, %v841_v21 }
 0x972   :  { %v810_v25 = vpop.xlane.xlu2 %809 }
 0x973   :  { %v812_v22 = vmul.f32 %v810_v25, %v798_v55 }
 0x975   :  { %v814_v15 = vadd.f32 1e-05, %v812_v22 }
 0x977   :  { %959 = vrsqrt.f32 %v814_v15  ;;  %vm831_vm7 = vweird.f32 %v814_v15 }
 0x97d   :  { %v960_v6 = vpop.eup %959 }
 0x97e   :  { %v826_v23 = vmul.f32 %v960_v6, %v814_v15  ;;  %vm832_vm6 = vweird.f32 %v960_v6 }
 0x97f   :  { %vm833_vm8 = vmor %vm831_vm7, %vm832_vm6 }
 0x980   :  { %v827_v24 = vmul.f32 %v960_v6, %v826_v23 }
 0x982   :  { %v828_v43 = vmul.f32 0.5, %v827_v24 }
 0x984   :  { %v829_v26 = vsub.f32 1.5, %v828_v43 }
 0x986   :  { %v830_v28 = vmul.f32 %v960_v6, %v829_v26 }
 0x988   :  { %v834_v29 = vsel %vm833_vm8, %v960_v6, %v830_v28 }
 0x989   :  { %v836_v11 = vmul.f32 %v834_v29, %v802_v61 }
 0x98b   :  { %v839_v4 = vmul.f32 %v837_v16, %v836_v11 }
 0x98d   :  { %v842_v30 = vadd.f32 %v840_v19, %v839_v4 }
 0x98f   :  { %844 = vst.msk [vmem:[#allocation8 + $0x8] sm:$0xff] %vm67_vm0, %v842_v30 }
 0x990   :  { %857 = dma.vmem_to_hbm [thread:$0]  %s850_s12, 256, %s852_s15, [#allocation4], %s1064_s20, %s1064_s20, %s1065_s21  }
 0x991   :  { %1061 = dma.done.wait [#allocation4], 256  }
 0x992   :  { %1062 = vsyncadd [#allocation4], 4294967040 }
 0x993   :  { %862 = vsyncpa [#allocation3], 1 }
 0x994   :  { %863 = vsyncpa [#allocation6], 1 }
 0x995   :  { %864 = vsyncpa [#allocation4], 1 }

</bundles_post_ra>
